<compile_context>
chip_gen: v7x
topology: tpu7x:2x2x1
jax: 0.10.0
libtpu: 0.0.40
codegen_flags: <defaults>
</compile_context>

<pallas_src>
import functools

import jax
import jax.numpy as jnp
from jax.experimental import pallas as pl
from jax.experimental.pallas import tpu as pltpu

LANE = 128
SUB = 8


def _round_up(x, m):
    return (x + m - 1) // m * m


def _relu(x):
    return jnp.maximum(x, 0.0)


def _make_cvae_kernel(n_enc, n_dec_rest, latent_dim, logvar_off, out_pad):
    """Fused CVAE forward kernel (one batch tile per grid step).

    Ref order (inputs):  x, condition, eps,
                         [enc W,b] * n_enc,
                         head W, head b            (fused mu|logvar, lane-aligned)
                         dec0 Wz, dec0 Wc, dec0 b,
                         [dec W,b] * n_dec_rest    (all lane-padded)
    Ref order (outputs): out slab: [recon_pad | mu_pad | logvar_pad]
    """

    def kernel(*refs):
        it = iter(refs)
        x_ref = next(it)
        cond_ref = next(it)
        eps_ref = next(it)
        enc = [(next(it), next(it)) for _ in range(n_enc)]
        head_w, head_b = next(it), next(it)
        dz_w, dc_w, d0_b = next(it), next(it), next(it)
        dec = [(next(it), next(it)) for _ in range(n_dec_rest)]
        out_ref = next(it)

        def dot(a, w_ref):
            # Matmul operands in the weight dtype (f32 or bf16), f32 MXU accumulate.
            return jnp.dot(a.astype(w_ref.dtype), w_ref[...],
                           preferred_element_type=jnp.float32)

        # ---- encoder (lane-padded hidden activations) ----
        h = x_ref[...]
        for w, b in enc:
            h = _relu(dot(h, w) + b[...])

        # ---- fused mu/logvar head: one matmul, lane-dense aligned store ----
        head = dot(h, head_w) + head_b[...]
        out_ref[:, out_pad:] = head                     # [mu|pad|logvar|pad] half of slab
        mu = head[:, :latent_dim]
        logvar = head[:, logvar_off:logvar_off + latent_dim]

        # ---- reparameterize: z = mu + eps * exp(0.5 * logvar) (f32 VPU/EUP) ----
        z = mu + eps_ref[...] * jnp.exp(0.5 * logvar)

        # ---- decoder: first layer is a split matmul over cat(z, condition) ----
        h = _relu(dot(z, dz_w) + dot(cond_ref[...], dc_w) + d0_b[...])
        for i, (w, b) in enumerate(dec):
            h = dot(h, w) + b[...]
            if i < n_dec_rest - 1:   # final decoder Linear has no activation
                h = _relu(h)

        out_ref[:, :out_pad] = h                        # recon half of slab

    return kernel


def init_cvae_params(key, input_dim, latent_dim, condition_dim, hidden_layers):
    """Deterministic parameter init. Weights already transposed to (in, out)."""

    def linear(key, fan_in, fan_out):
        kw, kb = jax.random.split(key)
        scale = 1.0 / jnp.sqrt(jnp.float32(fan_in))
        w = jax.random.uniform(kw, (fan_in, fan_out), jnp.float32, -scale, scale)
        b = jax.random.uniform(kb, (1, fan_out), jnp.float32, -scale, scale)
        return w, b

    params = {}
    keys = jax.random.split(key, 16)
    ki = iter(keys)

    enc = []
    dims = [input_dim] + list(hidden_layers)
    for i in range(len(hidden_layers)):
        enc.append(linear(next(ki), dims[i], dims[i + 1]))
    params["enc"] = enc

    params["mu"] = linear(next(ki), hidden_layers[-1], latent_dim)
    params["logvar"] = linear(next(ki), hidden_layers[-1], latent_dim)

    # decoder first layer: (latent + cond) -> hidden[-1], split into Wz / Wc
    w0, b0 = linear(next(ki), latent_dim + condition_dim, hidden_layers[-1])
    params["dec0"] = (w0[:latent_dim, :], w0[latent_dim:, :], b0)

    dec = []
    for i in reversed(range(len(hidden_layers) - 1)):
        dec.append(linear(next(ki), hidden_layers[i + 1], hidden_layers[i]))
    dec.append(linear(next(ki), hidden_layers[0], input_dim))
    params["dec"] = dec

    return params


@functools.partial(jax.jit, static_argnames=("block_batch", "param_dtype"))
def cvae_forward(params, x, condition, eps, *, block_batch=1024,
                 param_dtype=jnp.float32):
    batch, input_dim = x.shape
    cond_dim = condition.shape[-1]
    latent_dim = eps.shape[-1]

    # ---- batch tiling: TB multiple of 8 sublanes; >= 2 tiles (and best-effort
    # an even number) so v7x's two TensorCores both get balanced work ----
    tb = _round_up(min(int(block_batch), max(batch, SUB)), SUB)
    if batch >= 2 * SUB:
        tb = min(tb, _round_up(pl.cdiv(batch, 2), SUB))
    b_pad = _round_up(batch, tb)
    n_tiles = b_pad // tb
    if n_tiles > 1 and n_tiles % 2 == 1:
        # shrink the tile (extra steps are ~0.35 us each, no wasted compute)
        for cand in range(tb - SUB, SUB - 1, -SUB):
            if (_round_up(batch, cand) // cand) % 2 == 0:
                tb = cand
                b_pad = _round_up(batch, cand)
                n_tiles = b_pad // tb
                break

    def pad_rows(a):
        return jnp.pad(a, ((0, b_pad - batch), (0, 0))) if b_pad != batch else a

    x_p, cond_p, eps_p = pad_rows(x), pad_rows(condition), pad_rows(eps)

    cast = lambda w: w.astype(param_dtype)

    def pad_wb(w, b, in_pad, out_p):
        w = jnp.pad(w, ((0, in_pad - w.shape[0]), (0, out_p - w.shape[1])))
        b = jnp.pad(b, ((0, 0), (0, out_p - b.shape[1])))
        return cast(w), b

    hidden = [w.shape[1] for w, _ in params["enc"]]
    h_pads = [_round_up(h, LANE) for h in hidden]

    # encoder: layer 0 consumes raw x (K=input_dim); later layers consume the
    # previous layer's lane-padded (128-wide) activations.
    enc = []
    in_dims = [input_dim] + h_pads[:-1]
    for i, (w, b) in enumerate(params["enc"]):
        enc.append(pad_wb(w, b, in_dims[i], h_pads[i]))

    # fused, vreg-aligned mu|logvar head: columns [mu | pad->half | logvar | pad->half]
    half = _round_up(latent_dim, LANE)
    head_pad = 2 * half
    mu_w, mu_b = params["mu"]
    lv_w, lv_b = params["logvar"]
    head_w = jnp.zeros((h_pads[-1], head_pad), jnp.float32)
    head_w = head_w.at[:mu_w.shape[0], :latent_dim].set(mu_w)
    head_w = head_w.at[:lv_w.shape[0], half:half + latent_dim].set(lv_w)
    head_b = jnp.zeros((1, head_pad), jnp.float32)
    head_b = head_b.at[:, :latent_dim].set(mu_b)
    head_b = head_b.at[:, half:half + latent_dim].set(lv_b)
    head_w = cast(head_w)

    # decoder first layer (split matmul). Tiny K (latent / cond): keep f32 —
    # MXU time is negligible and it avoids narrow-dtype sub-sublane packing.
    dz_w, dc_w, d0_b = params["dec0"]
    dz_w = jnp.pad(dz_w, ((0, 0), (0, h_pads[-1] - dz_w.shape[1])))
    dc_w = jnp.pad(dc_w, ((0, 0), (0, h_pads[-1] - dc_w.shape[1])))
    d0_b = jnp.pad(d0_b, ((0, 0), (0, h_pads[-1] - d0_b.shape[1])))

    # decoder rest: hidden[-1]..hidden[0], then hidden[0] -> input_dim (all lane-padded)
    out_pad = _round_up(input_dim, LANE)
    dec_in = list(reversed(h_pads))
    dec_out = list(reversed(h_pads[:-1])) + [out_pad]
    dec = []
    for i, (w, b) in enumerate(params["dec"]):
        dec.append(pad_wb(w, b, dec_in[i], dec_out[i]))

    inputs = [x_p, cond_p, eps_p]
    for w, b in enc:
        inputs += [w, b]
    inputs += [head_w, head_b, dz_w, dc_w, d0_b]
    for w, b in dec:
        inputs += [w, b]

    # ---- BlockSpecs: batch-blocked activations, single-buffered resident weights ----
    def batch_spec(a):
        return pl.BlockSpec((tb, a.shape[-1]), lambda i: (i, 0))

    def resident_spec(a):
        # constant block index -> fetched once, stays VMEM-resident; single
        # buffer since there is nothing to double-buffer.
        return pl.BlockSpec(a.shape, lambda i: (0, 0),
                            pipeline_mode=pl.Buffered(1))

    in_specs = [batch_spec(x_p), batch_spec(cond_p), batch_spec(eps_p)]
    in_specs += [resident_spec(a) for a in inputs[3:]]

    # single fused output slab: [recon (out_pad lanes) | head (head_pad lanes)]
    slab = out_pad + head_pad
    out_shape = jax.ShapeDtypeStruct((b_pad, slab), jnp.float32)
    out_specs = pl.BlockSpec((tb, slab), lambda i: (i, 0))

    # ---- generation-aware VMEM budget ----
    resident_bytes = sum(int(a.size) * a.dtype.itemsize for a in inputs[3:])
    stream_row_bytes = 4 * (input_dim + cond_dim + latent_dim + slab)
    need = resident_bytes + 2 * tb * stream_row_bytes + (8 << 20)  # + scratch margin
    try:
        info = pltpu.get_tpu_info()
        phys = int(getattr(info, "vmem_capacity_bytes", 64 << 20))
    except Exception:
        phys = 64 << 20                           # conservative (v7x per-TC)
    cap = max(phys - (24 << 20), 32 << 20)        # ~40 MiB on v7x, ~104 MiB on v5e/v6e
    vmem_limit = int(min(max(need, 16 << 20), cap))

    kernel = _make_cvae_kernel(len(enc), len(dec), latent_dim,
                               logvar_off=half, out_pad=out_pad)

    out_p = pl.pallas_call(
        kernel,
        grid=(b_pad // tb,),
        out_shape=out_shape,
        in_specs=in_specs,
        out_specs=out_specs,
        compiler_params=pltpu.CompilerParams(
            dimension_semantics=("parallel",),    # megacore sharding on v7x
            vmem_limit_bytes=vmem_limit,
        ),
    )(*inputs)

    recon = out_p[:batch, :input_dim]
    mu = out_p[:batch, out_pad:out_pad + latent_dim]
    logvar = out_p[:batch, out_pad + half:out_pad + half + latent_dim]
    return recon, mu, logvar


def cvae_forward_ref(params, x, condition, eps):
    """Pure-JAX reference for correctness checking."""
    h = x
    for w, b in params["enc"]:
        h = jnp.maximum(h @ w + b, 0.0)
    mu = h @ params["mu"][0] + params["mu"][1]
    logvar = h @ params["logvar"][0] + params["logvar"][1]
    z = mu + eps * jnp.exp(0.5 * logvar)
    wz, wc, b0 = params["dec0"]
    h = jnp.maximum(z @ wz + condition @ wc + b0, 0.0)
    for i, (w, b) in enumerate(params["dec"]):
        h = h @ w + b
        if i < len(params["dec"]) - 1:
            h = jnp.maximum(h, 0.0)
    return h, mu, logvar


if __name__ == "__main__":
    # small, module-consistent shapes; batch=20 with TB=16 exercises the
    # multi-tile grid path plus batch padding.
    batch = 20
    input_dim = 16
    latent_dim = 8
    condition_dim = 4
    hidden_layers = [32, 64]

    root = jax.random.PRNGKey(0)
    kp, kx, kc, ke = jax.random.split(root, 4)

    params = init_cvae_params(kp, input_dim, latent_dim, condition_dim, hidden_layers)
    x = jax.random.normal(kx, (batch, input_dim), jnp.float32)
    condition = jax.random.normal(kc, (batch, condition_dim), jnp.float32)
    # reparameterization noise (torch.randn_like(std)) generated deterministically here
    eps = jax.random.normal(ke, (batch, latent_dim), jnp.float32)

    recon_r, mu_r, logvar_r = cvae_forward_ref(params, x, condition, eps)

    # f32 path, small explicit tile (multi-step grid)
    recon, mu, logvar = jax.block_until_ready(
        cvae_forward(params, x, condition, eps, block_batch=16))
    assert recon.shape == (batch, input_dim)
    assert mu.shape == (batch, latent_dim)
    assert logvar.shape == (batch, latent_dim)
    assert jnp.allclose(recon, recon_r, atol=2e-5, rtol=2e-5)
    assert jnp.allclose(mu, mu_r, atol=2e-5, rtol=2e-5)
    assert jnp.allclose(logvar, logvar_r, atol=2e-5, rtol=2e-5)

    # default (large) batch-tile path
    recon_d, mu_d, logvar_d = jax.block_until_ready(
        cvae_forward(params, x, condition, eps))
    assert jnp.allclose(recon_d, recon_r, atol=2e-5, rtol=2e-5)
    assert jnp.allclose(mu_d, mu_r, atol=2e-5, rtol=2e-5)
    assert jnp.allclose(logvar_d, logvar_r, atol=2e-5, rtol=2e-5)

    # bf16-weight opt-in fast path (loose tolerance for bf16 rounding)
    recon_bf, mu_bf, _ = jax.block_until_ready(
        cvae_forward(params, x, condition, eps, block_batch=16,
                     param_dtype=jnp.bfloat16))
    assert jnp.allclose(recon_bf, recon_r, atol=1e-1, rtol=1e-1)
    assert jnp.allclose(mu_bf, mu_r, atol=1e-1, rtol=1e-1)

    print("KERNEL_OK")
</pallas_src>

<mosaic_0001>
module attributes {stable_mosaic.version = 11 : i64} {
  func.func @kernel(%arg0: i32, %arg1: memref<16x16xf32, #tpu.memory_space<vmem>>, %arg2: memref<16x4xf32, #tpu.memory_space<vmem>>, %arg3: memref<16x8xf32, #tpu.memory_space<vmem>>, %arg4: memref<16x128xf32, #tpu.memory_space<vmem>>, %arg5: memref<1x128xf32, #tpu.memory_space<vmem>>, %arg6: memref<128x128xf32, #tpu.memory_space<vmem>>, %arg7: memref<1x128xf32, #tpu.memory_space<vmem>>, %arg8: memref<128x256xf32, #tpu.memory_space<vmem>>, %arg9: memref<1x256xf32, #tpu.memory_space<vmem>>, %arg10: memref<8x128xf32, #tpu.memory_space<vmem>>, %arg11: memref<4x128xf32, #tpu.memory_space<vmem>>, %arg12: memref<1x128xf32, #tpu.memory_space<vmem>>, %arg13: memref<128x128xf32, #tpu.memory_space<vmem>>, %arg14: memref<1x128xf32, #tpu.memory_space<vmem>>, %arg15: memref<128x128xf32, #tpu.memory_space<vmem>>, %arg16: memref<1x128xf32, #tpu.memory_space<vmem>>, %arg17: memref<16x384xf32, #tpu.memory_space<vmem>>) attributes {dimension_semantics = [#tpu.dimension_semantics<parallel>], iteration_bounds = array<i64: 2>, scalar_prefetch = 0 : i64, scratch_operands = 0 : i64, tpu.core_type = #tpu.core_type<tc>, window_params = [{transform_indices = @transform_0, window_bounds = array<i64: 16, 16>}, {transform_indices = @transform_1, window_bounds = array<i64: 16, 4>}, {transform_indices = @transform_2, window_bounds = array<i64: 16, 8>}, {pipeline_mode = #tpu.pipeline_mode<synchronous>, transform_indices = @transform_3, window_bounds = array<i64: 16, 128>}, {pipeline_mode = #tpu.pipeline_mode<synchronous>, transform_indices = @transform_4, window_bounds = array<i64: 1, 128>}, {pipeline_mode = #tpu.pipeline_mode<synchronous>, transform_indices = @transform_5, window_bounds = array<i64: 128, 128>}, {pipeline_mode = #tpu.pipeline_mode<synchronous>, transform_indices = @transform_6, window_bounds = array<i64: 1, 128>}, {pipeline_mode = #tpu.pipeline_mode<synchronous>, transform_indices = @transform_7, window_bounds = array<i64: 128, 256>}, {pipeline_mode = #tpu.pipeline_mode<synchronous>, transform_indices = @transform_8, window_bounds = array<i64: 1, 256>}, {pipeline_mode = #tpu.pipeline_mode<synchronous>, transform_indices = @transform_9, window_bounds = array<i64: 8, 128>}, {pipeline_mode = #tpu.pipeline_mode<synchronous>, transform_indices = @transform_10, window_bounds = array<i64: 4, 128>}, {pipeline_mode = #tpu.pipeline_mode<synchronous>, transform_indices = @transform_11, window_bounds = array<i64: 1, 128>}, {pipeline_mode = #tpu.pipeline_mode<synchronous>, transform_indices = @transform_12, window_bounds = array<i64: 128, 128>}, {pipeline_mode = #tpu.pipeline_mode<synchronous>, transform_indices = @transform_13, window_bounds = array<i64: 1, 128>}, {pipeline_mode = #tpu.pipeline_mode<synchronous>, transform_indices = @transform_14, window_bounds = array<i64: 128, 128>}, {pipeline_mode = #tpu.pipeline_mode<synchronous>, transform_indices = @transform_15, window_bounds = array<i64: 1, 128>}, {transform_indices = @transform_16, window_bounds = array<i64: 16, 384>}]} {
    %c0 = arith.constant 0 : index
    %c0_0 = arith.constant 0 : index
    %0 = vector.load %arg1[%c0, %c0_0] : memref<16x16xf32, #tpu.memory_space<vmem>>, vector<16x16xf32>
    %c0_1 = arith.constant 0 : index
    %c0_2 = arith.constant 0 : index
    %1 = vector.load %arg4[%c0_1, %c0_2] : memref<16x128xf32, #tpu.memory_space<vmem>>, vector<16x128xf32>
    %cst = arith.constant dense<0.000000e+00> : vector<16x128xf32>
    %2 = tpu.matmul %0, %1, %cst {dimension_numbers = #tpu.dot_dimension_numbers<[1], [0], [0], [1], [0, 0, 1, 1], [], []>} : vector<16x16xf32>, vector<16x128xf32>, vector<16x128xf32> -> vector<16x128xf32>
    %c0_3 = arith.constant 0 : index
    %c0_4 = arith.constant 0 : index
    %3 = vector.load %arg5[%c0_3, %c0_4] : memref<1x128xf32, #tpu.memory_space<vmem>>, vector<1x128xf32>
    %4 = vector.broadcast %3 : vector<1x128xf32> to vector<16x128xf32>
    %5 = arith.addf %2, %4 : vector<16x128xf32>
    %cst_5 = arith.constant 0.000000e+00 : f32
    %6 = vector.broadcast %cst_5 : f32 to vector<16x128xf32>
    %7 = arith.maximumf %5, %6 : vector<16x128xf32>
    %c0_6 = arith.constant 0 : index
    %c0_7 = arith.constant 0 : index
    %8 = vector.load %arg6[%c0_6, %c0_7] : memref<128x128xf32, #tpu.memory_space<vmem>>, vector<128x128xf32>
    %cst_8 = arith.constant dense<0.000000e+00> : vector<16x128xf32>
    %9 = tpu.matmul %7, %8, %cst_8 {dimension_numbers = #tpu.dot_dimension_numbers<[1], [0], [0], [1], [0, 0, 1, 1], [], []>} : vector<16x128xf32>, vector<128x128xf32>, vector<16x128xf32> -> vector<16x128xf32>
    %c0_9 = arith.constant 0 : index
    %c0_10 = arith.constant 0 : index
    %10 = vector.load %arg7[%c0_9, %c0_10] : memref<1x128xf32, #tpu.memory_space<vmem>>, vector<1x128xf32>
    %11 = vector.broadcast %10 : vector<1x128xf32> to vector<16x128xf32>
    %12 = arith.addf %9, %11 : vector<16x128xf32>
    %cst_11 = arith.constant 0.000000e+00 : f32
    %13 = vector.broadcast %cst_11 : f32 to vector<16x128xf32>
    %14 = arith.maximumf %12, %13 : vector<16x128xf32>
    %c0_12 = arith.constant 0 : index
    %c0_13 = arith.constant 0 : index
    %15 = vector.load %arg8[%c0_12, %c0_13] : memref<128x256xf32, #tpu.memory_space<vmem>>, vector<128x256xf32>
    %cst_14 = arith.constant dense<0.000000e+00> : vector<16x256xf32>
    %16 = tpu.matmul %14, %15, %cst_14 {dimension_numbers = #tpu.dot_dimension_numbers<[1], [0], [0], [1], [0, 0, 1, 1], [], []>} : vector<16x128xf32>, vector<128x256xf32>, vector<16x256xf32> -> vector<16x256xf32>
    %c0_15 = arith.constant 0 : index
    %c0_16 = arith.constant 0 : index
    %17 = vector.load %arg9[%c0_15, %c0_16] : memref<1x256xf32, #tpu.memory_space<vmem>>, vector<1x256xf32>
    %18 = vector.broadcast %17 : vector<1x256xf32> to vector<16x256xf32>
    %19 = arith.addf %16, %18 : vector<16x256xf32>
    %c0_17 = arith.constant 0 : index
    %c128 = arith.constant 128 : index
    %20 = vector.load %arg17[%c0_17, %c128] : memref<16x384xf32, #tpu.memory_space<vmem>>, vector<16x256xf32>
    tpu.vector_store %arg17[%c0_17, %c128], %19 {strides = array<i32>} : memref<16x384xf32, #tpu.memory_space<vmem>>, vector<16x256xf32>,
    %21 = vector.extract_strided_slice %19 {offsets = [0, 0], sizes = [16, 8], strides = [1, 1]} : vector<16x256xf32> to vector<16x8xf32>
    %22 = vector.extract_strided_slice %19 {offsets = [0, 128], sizes = [16, 8], strides = [1, 1]} : vector<16x256xf32> to vector<16x8xf32>
    %c0_18 = arith.constant 0 : index
    %c0_19 = arith.constant 0 : index
    %23 = vector.load %arg3[%c0_18, %c0_19] : memref<16x8xf32, #tpu.memory_space<vmem>>, vector<16x8xf32>
    %cst_20 = arith.constant 5.000000e-01 : f32
    %24 = vector.broadcast %cst_20 : f32 to vector<16x8xf32>
    %25 = arith.mulf %24, %22 : vector<16x8xf32>
    %26 = math.exp %25 : vector<16x8xf32>
    %27 = arith.mulf %23, %26 : vector<16x8xf32>
    %28 = arith.addf %21, %27 : vector<16x8xf32>
    %c0_21 = arith.constant 0 : index
    %c0_22 = arith.constant 0 : index
    %29 = vector.load %arg10[%c0_21, %c0_22] : memref<8x128xf32, #tpu.memory_space<vmem>>, vector<8x128xf32>
    %cst_23 = arith.constant dense<0.000000e+00> : vector<16x128xf32>
    %30 = tpu.matmul %28, %29, %cst_23 {dimension_numbers = #tpu.dot_dimension_numbers<[1], [0], [0], [1], [0, 0, 1, 1], [], []>} : vector<16x8xf32>, vector<8x128xf32>, vector<16x128xf32> -> vector<16x128xf32>
    %c0_24 = arith.constant 0 : index
    %c0_25 = arith.constant 0 : index
    %31 = vector.load %arg2[%c0_24, %c0_25] : memref<16x4xf32, #tpu.memory_space<vmem>>, vector<16x4xf32>
    %c0_26 = arith.constant 0 : index
    %c0_27 = arith.constant 0 : index
    %32 = vector.load %arg11[%c0_26, %c0_27] : memref<4x128xf32, #tpu.memory_space<vmem>>, vector<4x128xf32>
    %cst_28 = arith.constant dense<0.000000e+00> : vector<16x128xf32>
    %33 = tpu.matmul %31, %32, %cst_28 {dimension_numbers = #tpu.dot_dimension_numbers<[1], [0], [0], [1], [0, 0, 1, 1], [], []>} : vector<16x4xf32>, vector<4x128xf32>, vector<16x128xf32> -> vector<16x128xf32>
    %34 = arith.addf %30, %33 : vector<16x128xf32>
    %c0_29 = arith.constant 0 : index
    %c0_30 = arith.constant 0 : index
    %35 = vector.load %arg12[%c0_29, %c0_30] : memref<1x128xf32, #tpu.memory_space<vmem>>, vector<1x128xf32>
    %36 = vector.broadcast %35 : vector<1x128xf32> to vector<16x128xf32>
    %37 = arith.addf %34, %36 : vector<16x128xf32>
    %cst_31 = arith.constant 0.000000e+00 : f32
    %38 = vector.broadcast %cst_31 : f32 to vector<16x128xf32>
    %39 = arith.maximumf %37, %38 : vector<16x128xf32>
    %c0_32 = arith.constant 0 : index
    %c0_33 = arith.constant 0 : index
    %40 = vector.load %arg13[%c0_32, %c0_33] : memref<128x128xf32, #tpu.memory_space<vmem>>, vector<128x128xf32>
    %cst_34 = arith.constant dense<0.000000e+00> : vector<16x128xf32>
    %41 = tpu.matmul %39, %40, %cst_34 {dimension_numbers = #tpu.dot_dimension_numbers<[1], [0], [0], [1], [0, 0, 1, 1], [], []>} : vector<16x128xf32>, vector<128x128xf32>, vector<16x128xf32> -> vector<16x128xf32>
    %c0_35 = arith.constant 0 : index
    %c0_36 = arith.constant 0 : index
    %42 = vector.load %arg14[%c0_35, %c0_36] : memref<1x128xf32, #tpu.memory_space<vmem>>, vector<1x128xf32>
    %43 = vector.broadcast %42 : vector<1x128xf32> to vector<16x128xf32>
    %44 = arith.addf %41, %43 : vector<16x128xf32>
    %cst_37 = arith.constant 0.000000e+00 : f32
    %45 = vector.broadcast %cst_37 : f32 to vector<16x128xf32>
    %46 = arith.maximumf %44, %45 : vector<16x128xf32>
    %c0_38 = arith.constant 0 : index
    %c0_39 = arith.constant 0 : index
    %47 = vector.load %arg15[%c0_38, %c0_39] : memref<128x128xf32, #tpu.memory_space<vmem>>, vector<128x128xf32>
    %cst_40 = arith.constant dense<0.000000e+00> : vector<16x128xf32>
    %48 = tpu.matmul %46, %47, %cst_40 {dimension_numbers = #tpu.dot_dimension_numbers<[1], [0], [0], [1], [0, 0, 1, 1], [], []>} : vector<16x128xf32>, vector<128x128xf32>, vector<16x128xf32> -> vector<16x128xf32>
    %c0_41 = arith.constant 0 : index
    %c0_42 = arith.constant 0 : index
    %49 = vector.load %arg16[%c0_41, %c0_42] : memref<1x128xf32, #tpu.memory_space<vmem>>, vector<1x128xf32>
    %50 = vector.broadcast %49 : vector<1x128xf32> to vector<16x128xf32>
    %51 = arith.addf %48, %50 : vector<16x128xf32>
    %c0_43 = arith.constant 0 : index
    %c0_44 = arith.constant 0 : index
    %52 = vector.load %arg17[%c0_43, %c0_44] : memref<16x384xf32, #tpu.memory_space<vmem>>, vector<16x128xf32>
    tpu.vector_store %arg17[%c0_43, %c0_44], %51 {strides = array<i32>} : memref<16x384xf32, #tpu.memory_space<vmem>>, vector<16x128xf32>,
    return
  }
  func.func @transform_0(%arg0: i32) -> (i32, i32) {
    %c0_i32 = arith.constant 0 : i32
    %c0_i32_0 = arith.constant 0 : i32
    return %arg0, %c0_i32 : i32, i32
  }
  func.func @transform_1(%arg0: i32) -> (i32, i32) {
    %c0_i32 = arith.constant 0 : i32
    %c0_i32_0 = arith.constant 0 : i32
    return %arg0, %c0_i32 : i32, i32
  }
  func.func @transform_2(%arg0: i32) -> (i32, i32) {
    %c0_i32 = arith.constant 0 : i32
    %c0_i32_0 = arith.constant 0 : i32
    return %arg0, %c0_i32 : i32, i32
  }
  func.func @transform_3(%arg0: i32) -> (i32, i32) {
    %c0_i32 = arith.constant 0 : i32
    %c0_i32_0 = arith.constant 0 : i32
    %c0_i32_1 = arith.constant 0 : i32
    return %c0_i32, %c0_i32_0 : i32, i32
  }
  func.func @transform_4(%arg0: i32) -> (i32, i32) {
    %c0_i32 = arith.constant 0 : i32
    %c0_i32_0 = arith.constant 0 : i32
    %c0_i32_1 = arith.constant 0 : i32
    return %c0_i32, %c0_i32_0 : i32, i32
  }
  func.func @transform_5(%arg0: i32) -> (i32, i32) {
    %c0_i32 = arith.constant 0 : i32
    %c0_i32_0 = arith.constant 0 : i32
    %c0_i32_1 = arith.constant 0 : i32
    return %c0_i32, %c0_i32_0 : i32, i32
  }
  func.func @transform_6(%arg0: i32) -> (i32, i32) {
    %c0_i32 = arith.constant 0 : i32
    %c0_i32_0 = arith.constant 0 : i32
    %c0_i32_1 = arith.constant 0 : i32
    return %c0_i32, %c0_i32_0 : i32, i32
  }
  func.func @transform_7(%arg0: i32) -> (i32, i32) {
    %c0_i32 = arith.constant 0 : i32
    %c0_i32_0 = arith.constant 0 : i32
    %c0_i32_1 = arith.constant 0 : i32
    return %c0_i32, %c0_i32_0 : i32, i32
  }
  func.func @transform_8(%arg0: i32) -> (i32, i32) {
    %c0_i32 = arith.constant 0 : i32
    %c0_i32_0 = arith.constant 0 : i32
    %c0_i32_1 = arith.constant 0 : i32
    return %c0_i32, %c0_i32_0 : i32, i32
  }
  func.func @transform_9(%arg0: i32) -> (i32, i32) {
    %c0_i32 = arith.constant 0 : i32
    %c0_i32_0 = arith.constant 0 : i32
    %c0_i32_1 = arith.constant 0 : i32
    return %c0_i32, %c0_i32_0 : i32, i32
  }
  func.func @transform_10(%arg0: i32) -> (i32, i32) {
    %c0_i32 = arith.constant 0 : i32
    %c0_i32_0 = arith.constant 0 : i32
    %c0_i32_1 = arith.constant 0 : i32
    return %c0_i32, %c0_i32_0 : i32, i32
  }
  func.func @transform_11(%arg0: i32) -> (i32, i32) {
    %c0_i32 = arith.constant 0 : i32
    %c0_i32_0 = arith.constant 0 : i32
    %c0_i32_1 = arith.constant 0 : i32
    return %c0_i32, %c0_i32_0 : i32, i32
  }
  func.func @transform_12(%arg0: i32) -> (i32, i32) {
    %c0_i32 = arith.constant 0 : i32
    %c0_i32_0 = arith.constant 0 : i32
    %c0_i32_1 = arith.constant 0 : i32
    return %c0_i32, %c0_i32_0 : i32, i32
  }
  func.func @transform_13(%arg0: i32) -> (i32, i32) {
    %c0_i32 = arith.constant 0 : i32
    %c0_i32_0 = arith.constant 0 : i32
    %c0_i32_1 = arith.constant 0 : i32
    return %c0_i32, %c0_i32_0 : i32, i32
  }
  func.func @transform_14(%arg0: i32) -> (i32, i32) {
    %c0_i32 = arith.constant 0 : i32
    %c0_i32_0 = arith.constant 0 : i32
    %c0_i32_1 = arith.constant 0 : i32
    return %c0_i32, %c0_i32_0 : i32, i32
  }
  func.func @transform_15(%arg0: i32) -> (i32, i32) {
    %c0_i32 = arith.constant 0 : i32
    %c0_i32_0 = arith.constant 0 : i32
    %c0_i32_1 = arith.constant 0 : i32
    return %c0_i32, %c0_i32_0 : i32, i32
  }
  func.func @transform_16(%arg0: i32) -> (i32, i32) {
    %c0_i32 = arith.constant 0 : i32
    %c0_i32_0 = arith.constant 0 : i32
    return %arg0, %c0_i32 : i32, i32
  }
}

</mosaic_0001>

<bundles_post_ra>
// kernel: cvae_forward.1
= control target key start
LH: loop header
LB: loop body
LE: loop exit
PB: predicated region body
PF: predicated region fallthrough
CT: control target
= control target key end

     0   :  { %s1823_s21 = smov 0   ;;  %s2133_s0 = inlined_call_operand.vmem [shape: f32[32,16], index: 0, kind: input, shape index: {}]   ;;  %s2134_s1 = inlined_call_operand.vmem [shape: f32[32,4], index: 1, kind: input, shape index: {}]   ;;  %s2135_s2 = inlined_call_operand.vmem [shape: f32[32,8], index: 2, kind: input, shape index: {}]   ;;  %s2136_s3 = inlined_call_operand.vmem [shape: f32[16,128], index: 3, kind: input, shape index: {}]   ;;  %s2137_s4 = inlined_call_operand.vmem [shape: f32[1,128], index: 4, kind: input, shape index: {}]   ;;  %s2138_s5 = inlined_call_operand.vmem [shape: f32[128,128], index: 5, kind: input, shape index: {}]   ;;  %s2139_s6 = inlined_call_operand.vmem [shape: f32[1,128], index: 6, kind: input, shape index: {}]   ;;  %s2140_s7 = inlined_call_operand.vmem [shape: f32[128,256], index: 7, kind: input, shape index: {}]   ;;  %s2141_s8 = inlined_call_operand.vmem [shape: f32[1,256], index: 8, kind: input, shape index: {}]   ;;  %s2142_s9 = inlined_call_operand.vmem [shape: f32[8,128], index: 9, kind: input, shape index: {}]   ;;  %s2143_s10 = inlined_call_operand.vmem [shape: f32[4,128], index: 10, kind: input, shape index: {}]   ;;  %s2144_s11 = inlined_call_operand.vmem [shape: f32[1,128], index: 11, kind: input, shape index: {}]   ;;  %s2145_s12 = inlined_call_operand.vmem [shape: f32[128,128], index: 12, kind: input, shape index: {}]   ;;  %s2146_s13 = inlined_call_operand.vmem [shape: f32[1,128], index: 13, kind: input, shape index: {}]   ;;  %s2147_s14 = inlined_call_operand.vmem [shape: f32[128,128], index: 14, kind: input, shape index: {}]   ;;  %s2148_s15 = inlined_call_operand.vmem [shape: f32[1,128], index: 15, kind: input, shape index: {}]   ;;  %s2149_s16 = inlined_call_operand.vmem [shape: f32[32,384], index: 16, kind: output, shape index: {}]  }
   0x1   :  { %2150 = sst [smem:[#allocation2_spill]] %s2133_s0 }
   0x2 LB: > { %s1368_s22 = sadd.s32 4294967295, %s1735_s21   ;;  %p1372_p0 = scmp.ge.s32.totalorder %s1735_s21, 1  ;;  %s1735_s21 = sphi %s1823_s21, %s26_s21  }
   0x3   : > { %p485_p1 = scmp.lt.s32.totalorder %s1735_s21, 3 }
   0x5   : > { %p486_p2 = pnand %p1372_p0, %p485_p1 }
   0x6   : > { %v573_v0 = vld [vmem:[%s2136_s3] sm:$0xff] (!%p486_p2)  ;;  %v574_v1 = vld [vmem:[%s2136_s3 + $0x8] sm:$0xff] (!%p486_p2)  ;;  %s1373_s27 = sshll.u32 (!%p486_p2), %s1368_s22, 1  ;;  %v668_v5 = vld [vmem:[%s2138_s5 + $0x10] sm:$0xff] (!%p486_p2)  ;;  %vm582_vm0 = vcmask (!%p486_p2), 130048   ;;  %s2151_s30 = sld [smem:[#allocation2_spill]] (!%p486_p2) }
   0x7   : > { %489 = sbr.rel (%p486_p2) target bundleno = 1344 (0x540), region = 84  ;;  %v666_v2 = vld [vmem:[%s2138_s5] sm:$0xff] (!%p486_p2)  ;;  %v1581_v3 = vpack.c.bf16 (!%p486_p2), %v574_v1, %v573_v0  ;;  %p547_p3 = scmp.lt.s32.totalorder (!%p486_p2), %s1373_s27, 3  ;;  %v667_v4 = vld [vmem:[%s2138_s5 + $0x8] sm:$0xff] (!%p486_p2)  ;;  %v669_v6 = vld [vmem:[%s2138_s5 + $0x18] sm:$0xff] (!%p486_p2)  ;;  %vm914_vm1 = vcmask (!%p486_p2), 1043456  }
   0x8   : > { %v1585_v7 = vpack.c.bf16 (!%p486_p2), %v667_v4, %v666_v2  ;;  %v1589_v8 = vpack.c.bf16 (!%p486_p2), %v669_v6, %v668_v5  ;;  %v670_v9 = vld [vmem:[%s2138_s5 + $0x20] sm:$0xff] (!%p486_p2)  ;;  %v671_v10 = vld [vmem:[%s2138_s5 + $0x28] sm:$0xff] (!%p486_p2)  ;;  %v672_v12 = vld [vmem:[%s2138_s5 + $0x30] sm:$0xff] (!%p486_p2)  ;;  %vm907_vm2 = vcmask (!%p486_p2), 31744   ;;  %vm993_vm3 = vcmask (!%p486_p2), 64512  }
   0x9   : > { %1582 = vmatprep.subr.bf16.mxu0 (!%p486_p2), %v1581_v3  ;;  %v1593_v11 = vpack.c.bf16 (!%p486_p2), %v671_v10, %v670_v9  ;;  %v673_v15 = vld [vmem:[%s2138_s5 + $0x38] sm:$0xff] (!%p486_p2)  ;;  %v674_v17 = vld [vmem:[%s2138_s5 + $0x40] sm:$0xff] (!%p486_p2)  ;;  %v675_v18 = vld [vmem:[%s2138_s5 + $0x48] sm:$0xff] (!%p486_p2) }
   0xa   : > { %1584 = vmatpush3.bf16.msra.mxu0 (!%p486_p2), %v1581_v3  ;;  %1586 = vmatprep.subr.bf16.mxu1 (!%p486_p2), %v1585_v7  ;;  %v1597_v16 = vpack.c.bf16 (!%p486_p2), %v673_v15, %v672_v12  ;;  %v1601_v19 = vpack.c.bf16 (!%p486_p2), %v675_v18, %v674_v17  ;;  %v676_v20 = vld [vmem:[%s2138_s5 + $0x50] sm:$0xff] (!%p486_p2)  ;;  %v677_v21 = vld [vmem:[%s2138_s5 + $0x58] sm:$0xff] (!%p486_p2)  ;;  %v678_v23 = vld [vmem:[%s2138_s5 + $0x60] sm:$0xff] (!%p486_p2) }
   0xb   : > { %1588 = vmatpush3.bf16.msra.mxu1 (!%p486_p2), %v1585_v7  ;;  %v1605_v22 = vpack.c.bf16 (!%p486_p2), %v677_v21, %v676_v20  ;;  %v679_v24 = vld [vmem:[%s2138_s5 + $0x68] sm:$0xff] (!%p486_p2)  ;;  %v680_v26 = vld [vmem:[%s2138_s5 + $0x70] sm:$0xff] (!%p486_p2)  ;;  %v681_v27 = vld [vmem:[%s2138_s5 + $0x78] sm:$0xff] (!%p486_p2)  ;;  %v1737_v20 = vmov (!%p486_p2), 0.0  }
   0xc   : > { %1590 = vmatprep.subr.bf16.mxu1 (!%p486_p2), %v1589_v8  ;;  %v1609_v25 = vpack.c.bf16 (!%p486_p2), %v679_v24, %v678_v23  ;;  %v1613_v28 = vpack.c.bf16 (!%p486_p2), %v681_v27, %v680_v26  ;;  %v767_v29 = vld [vmem:[%s2140_s7 + $0x8] sm:$0xff] (!%p486_p2)  ;;  %v769_v30 = vld [vmem:[%s2140_s7 + $0x18] sm:$0xff] (!%p486_p2)  ;;  %v766_v31 = vld [vmem:[%s2140_s7] sm:$0xff] (!%p486_p2) }
   0xd   : > { %v1617_v32 = vpack.c.bf16 (!%p486_p2), %v769_v30, %v767_v29  ;;  %v768_v33 = vld [vmem:[%s2140_s7 + $0x10] sm:$0xff] (!%p486_p2)  ;;  %v771_v34 = vld [vmem:[%s2140_s7 + $0x28] sm:$0xff] (!%p486_p2)  ;;  %v773_v35 = vld [vmem:[%s2140_s7 + $0x38] sm:$0xff] (!%p486_p2) }
   0xe   : > { %s2153_s27 = smov (!%p547_p3, %s1373_s27), 3  ;;  %v1619_v36 = vpack.c.bf16 %v768_v33, %v766_v31  ;;  %v1621_v37 = vpack.c.bf16 %v773_v35, %v771_v34  ;;  %v770_v38 = vld [vmem:[%s2140_s7 + $0x20] sm:$0xff]  ;;  %v772_v39 = vld [vmem:[%s2140_s7 + $0x30] sm:$0xff]  ;;  %v775_v40 = vld [vmem:[%s2140_s7 + $0x48] sm:$0xff] }
   0xf   : > { %s1858_s26 = sshll.u32 %s2153_s27, 3  ;;  %1592 = vmatpush3.bf16.msra.mxu1 %v1589_v8  ;;  %1618 = vmatprep.subr.bf16.mxu0 %v1617_v32  ;;  %v777_v41 = vld [vmem:[%s2140_s7 + $0x58] sm:$0xff]  ;;  %v1623_v42 = vpack.c.bf16 %v772_v39, %v770_v38  ;;  %v774_v44 = vld [vmem:[%s2140_s7 + $0x40] sm:$0xff]  ;;  %v776_v45 = vld [vmem:[%s2140_s7 + $0x50] sm:$0xff]  ;;  %s1715_s23 = smul.u32 24, %s2153_s27 }
  0x10   : > { %s550_s0 = scalar_lea.vmem %s2151_s30, %s1858_s26  ;;  %1594 = vmatprep.subr.bf16.mxu1 %v1593_v11  ;;  %v1625_v43 = vpack.c.bf16 %v777_v41, %v775_v40  ;;  %v779_v46 = vld [vmem:[%s2140_s7 + $0x68] sm:$0xff]  ;;  %v781_v47 = vld [vmem:[%s2140_s7 + $0x78] sm:$0xff]  ;;  %v1627_v48 = vpack.c.bf16 %v776_v45, %v774_v44  ;;  %v778_v50 = vld [vmem:[%s2140_s7 + $0x60] sm:$0xff]  ;;  %s556_s28 = scalar_lea.vmem %s2134_s1, %s1858_s26 }
  0x11   : > { %v571_v13 = vld [vmem:[%s550_s0] sm:$0xff]  ;;  %v572_v14 = vld [vmem:[%s550_s0 + $0x8] sm:$0xff]  ;;  %v1629_v49 = vpack.c.bf16 %v781_v47, %v779_v46  ;;  %v780_v51 = vld [vmem:[%s2140_s7 + $0x70] sm:$0xff]  ;;  %s562_s30 = scalar_lea.vmem %s2135_s2, %s1858_s26 }
  0x12   : > { %1463 = vmatprep.mubr.msk.f32.mxu0 %vm582_vm0, %v571_v13  ;;  %v783_v52 = vld [vmem:[%s2140_s7 + $0x88] sm:$0xff]  ;;  %v785_v53 = vld [vmem:[%s2140_s7 + $0x98] sm:$0xff]  ;;  %v1631_v54 = vpack.c.bf16 %v780_v51, %v778_v50  ;;  %v782_v56 = vld [vmem:[%s2140_s7 + $0x80] sm:$0xff] }
  0x13   : > { %1464 = vmatmul.mubr.msk.f32.vlgmr.msra.gmra.mrb[0].mxu0 %vm582_vm0, %v572_v14  ;;  %1596 = vmatpush3.bf16.msra.mxu1 %v1593_v11  ;;  %v1633_v55 = vpack.c.bf16 %v785_v53, %v783_v52  ;;  %v784_v57 = vld [vmem:[%s2140_s7 + $0x90] sm:$0xff]  ;;  %v787_v58 = vld [vmem:[%s2140_s7 + $0xa8] sm:$0xff]  ;;  %v789_v59 = vld [vmem:[%s2140_s7 + $0xb8] sm:$0xff]  ;;  %v800_v53 = vlaneseq }
  0x14   : > { %1598 = vmatprep.subr.bf16.mxu1 %v1597_v16  ;;  %1620 = vmatpush1.bf16.msra.mxu0 %v1619_v36  ;;  %v1635_v60 = vpack.c.bf16 %v784_v57, %v782_v56  ;;  %v1637_v61 = vpack.c.bf16 %v789_v59, %v787_v58  ;;  %v786_v62 = vld [vmem:[%s2140_s7 + $0xa0] sm:$0xff]  ;;  %v788_v63 = vld [vmem:[%s2140_s7 + $0xb0] sm:$0xff]  ;;  %v791_v0 = vld [vmem:[%s2140_s7 + $0xc8] sm:$0xff] }
  0x15   : > { %1622 = vmatprep.subr.bf16.mxu0 %v1621_v37  ;;  %v793_v1 = vld [vmem:[%s2140_s7 + $0xd8] sm:$0xff]  ;;  %v1639_v2 = vpack.c.bf16 %v788_v63, %v786_v62  ;;  %v790_v4 = vld [vmem:[%s2140_s7 + $0xc0] sm:$0xff]  ;;  %v792_v5 = vld [vmem:[%s2140_s7 + $0xd0] sm:$0xff]  ;;  %874 = vmatprep.mubr.f32.mxu0 %v1737_v20 }
  0x16   : > { %v1641_v3 = vpack.c.bf16 %v793_v1, %v791_v0  ;;  %v1643_v6 = vpack.c.bf16 %v792_v5, %v790_v4  ;;  %v1381_v7 = vld [vmem:[%s2137_s4] ss:$0 sm:$0xff]  ;;  %v795_v14 = vld [vmem:[%s2140_s7 + $0xe8] sm:$0xff]  ;;  %v797_v15 = vld [vmem:[%s2140_s7 + $0xf8] sm:$0xff] }
  0x17   : > { %1600 = vmatpush3.bf16.msra.mxu1 %v1597_v16  ;;  %v1645_v16 = vpack.c.bf16 %v797_v15, %v795_v14  ;;  %v794_v17 = vld [vmem:[%s2140_s7 + $0xe0] sm:$0xff]  ;;  %v796_v18 = vld [vmem:[%s2140_s7 + $0xf0] sm:$0xff]  ;;  %v905_v31 = vld [vmem:[%s556_s28 + $0x8] sm:$0xff] }
  0x18   : > { %1602 = vmatprep.subr.bf16.mxu1 %v1601_v19  ;;  %1624 = vmatpush1.bf16.msra.mxu0 %v1623_v42  ;;  %v1384_v21 = vld [vmem:[%s2139_s6] ss:$0 sm:$0xff]  ;;  %v1087_v33 = vld [vmem:[%s2145_s12 + $0x8] sm:$0xff]  ;;  %v1088_v34 = vld [vmem:[%s2145_s12 + $0x10] sm:$0xff] }
  0x19   : > { %1626 = vmatprep.subr.bf16.mxu0 %v1625_v43  ;;  %v903_v29 = vld [vmem:[%s2142_s9] sm:$0xff]  ;;  %v1089_v36 = vld [vmem:[%s2145_s12 + $0x18] sm:$0xff]  ;;  %v1091_v39 = vld [vmem:[%s2145_s12 + $0x28] sm:$0xff] }
  0x1a   : > { %v904_v30 = vld [vmem:[%s556_s28] sm:$0xff]  ;;  %v1653_v37 = vpack.c.bf16 %v1089_v36, %v1088_v34  ;;  %v1092_v41 = vld [vmem:[%s2145_s12 + $0x30] sm:$0xff]  ;;  %v1093_v42 = vld [vmem:[%s2145_s12 + $0x38] sm:$0xff]  ;;  %s2055_s28 = scalar_lea.vmem %s2149_s16, %s1715_s23 }
  0x1b   : > { %1604 = vmatpush3.bf16.msra.mxu1 %v1601_v19  ;;  %v1647_v19 = vpack.c.bf16 %v796_v18, %v794_v17  ;;  %v1086_v32 = vld [vmem:[%s2145_s12] sm:$0xff]  ;;  %v1661_v43 = vpack.c.bf16 %v1093_v42, %v1092_v41  ;;  %v1095_v45 = vld [vmem:[%s2145_s12 + $0x48] sm:$0xff]  ;;  %v1096_v47 = vld [vmem:[%s2145_s12 + $0x50] sm:$0xff] }
  0x1c   : > { %1606 = vmatprep.subr.bf16.mxu1 %v1605_v22  ;;  %1628 = vmatpush1.bf16.msra.mxu0 %v1627_v48  ;;  %v1649_v35 = vpack.c.bf16 %v1087_v33, %v1086_v32  ;;  %v1090_v38 = vld [vmem:[%s2145_s12 + $0x20] sm:$0xff]  ;;  %v1097_v48 = vld [vmem:[%s2145_s12 + $0x58] sm:$0xff]  ;;  %v1099_v51 = vld [vmem:[%s2145_s12 + $0x68] sm:$0xff] }
  0x1d   : > { %1630 = vmatprep.subr.bf16.mxu0 %v1629_v49  ;;  %v1657_v40 = vpack.c.bf16 %v1091_v39, %v1090_v38  ;;  %v1094_v44 = vld [vmem:[%s2145_s12 + $0x40] sm:$0xff]  ;;  %v1669_v49 = vpack.c.bf16 %v1097_v48, %v1096_v47  ;;  %v1101_v17 = vld [vmem:[%s2145_s12 + $0x78] sm:$0xff]  ;;  %v1195_v32 = vld [vmem:[%s2147_s14 + $0x48] sm:$0xff] }
  0x1e   : > { %v1665_v46 = vpack.c.bf16 %v1095_v45, %v1094_v44  ;;  %v1098_v50 = vld [vmem:[%s2145_s12 + $0x60] sm:$0xff]  ;;  %v1196_v34 = vld [vmem:[%s2147_s14 + $0x50] sm:$0xff]  ;;  %v1199_v38 = vld [vmem:[%s2147_s14 + $0x68] sm:$0xff] }
  0x1f   : > { %1608 = vmatpush3.bf16.msra.mxu1 %v1605_v22  ;;  %v1673_v52 = vpack.c.bf16 %v1099_v51, %v1098_v50  ;;  %v798_v56 = vld [vmem:[%s2141_s8] sm:$0x3]  ;;  %v1200_v47 = vld [vmem:[%s2147_s14 + $0x70] sm:$0xff]  ;;  %v1201_v48 = vld [vmem:[%s2147_s14 + $0x78] sm:$0xff] }
  0x20   : > { %1610 = vmatprep.subr.bf16.mxu1 %v1609_v25  ;;  %1632 = vmatpush1.bf16.msra.mxu0 %v1631_v54  ;;  %v801_v54 = vshrl.u32 %v800_v53, 7  ;;  %v1391_v50 = vld [vmem:[%s2146_s13] ss:$0 sm:$0xff] }
  0x21   : > { %1634 = vmatprep.subr.bf16.mxu0 %v1633_v55 }
  0x22   : > { %v802_v55 = vsub.s32 0, %v801_v54  ;;  %v806_v57 = vsub.s32 1, %v801_v54 }
  0x23   : > { %1612 = vmatpush3.bf16.msra.mxu1 %v1609_v25 }
  0x24   : > { %1614 = vmatprep.subr.bf16.mxu1 %v1613_v28  ;;  %1636 = vmatpush1.bf16.msra.mxu0 %v1635_v60  ;;  %v803_v58 = vrot.slane %v798_v56, %v802_v55  ;;  %v807_v59 = vrot.slane %v798_v56, %v806_v57  ;;  %v1392_v57 = vld [vmem:[%s2148_s15] ss:$0 sm:$0xff] }
  0x25   : > { %1638 = vmatprep.subr.bf16.mxu0 %v1637_v61 }
  0x27   : > { %1616 = vmatpush3.bf16.msra.mxu1 %v1613_v28  ;;  %v906_v28 = vld [vmem:[%s2143_s10] sm:$0xf] }
  0x28   : > { %1640 = vmatpush1.bf16.msra.mxu0 %v1639_v2  ;;  %1501 = vmatprep.subr.msk.mxu1 %vm914_vm1, %v906_v28 }
  0x29   : > { %1642 = vmatprep.subr.bf16.mxu0 %v1641_v3 }
  0x2c   : > { %1644 = vmatpush1.bf16.msra.mxu0 %v1643_v6 }
  0x2d   : > { %1646 = vmatprep.subr.bf16.mxu0 %v1645_v16  ;;  %v1100_v16 = vld [vmem:[%s2145_s12 + $0x70] sm:$0xff] }
  0x2e   : > { %v1677_v18 = vpack.c.bf16 %v1101_v17, %v1100_v16 }
  0x30   : > { %1648 = vmatpush1.bf16.msra.mxu0 %v1647_v19  ;;  %v1186_v19 = vld [vmem:[%s2147_s14] sm:$0xff] }
  0x31   : > { %1650 = vmatprep.subr.bf16.mxu0 %v1649_v35 }
  0xe6   : > { %v1465_v8 = vpop.f32.mrb[0].mxu0 }
  0xe7   : > { %v661_v9 = vadd.f32 %v1465_v8, %v1381_v7  ;;  %v655_v10 = vpop.f32.mrb[1].mxu0  ;;  %v891_v8 = vld [vmem:[%s562_s30] sm:$0xff] }
  0xe8   : > { %v656_v11 = vadd.f32 %v1381_v7, %v655_v10 }
  0xe9   : > { %v665_v13 = vmax.f32 %v661_v9, 0.0 }
  0xea   : > { %v664_v12 = vmax.f32 %v656_v11, 0.0  ;;  %v892_v11 = vld [vmem:[%s562_s30 + $0x8] sm:$0xff] }
  0xec   : > { %1498 = vmatprep.mubr.f32.mxu1 %v664_v12 }
  0xed   : > { %1499 = vmatmul.mubr.f32.vlgmr.msra.gmra.mrb[0].mxu1 %v665_v13 }
  0xee   : > { %1502 = vmatpush3.msk.msra.mxu1 %vm914_vm1, %v906_v28  ;;  %1503 = vmatprep.mubr.msk.f32.mxu1 %vm907_vm2, %v904_v30  ;;  %v1192_v28 = vld [vmem:[%s2147_s14 + $0x30] sm:$0xff] }
  0xef   : > { %1506 = vmatprep.subr.mxu1 %v903_v29 }
  0xf1   : > { %1504 = vmatmul.mubr.msk.f32.vlgmr.msra.gmra.mrb[2].mxu1 %vm907_vm2, %v905_v31  ;;  %v1194_v31 = vld [vmem:[%s2147_s14 + $0x40] sm:$0xff] }
  0xf2   : > { %1507 = vmatpush3.msra.mxu1 %v903_v29  ;;  %v1193_v29 = vld [vmem:[%s2147_s14 + $0x38] sm:$0xff]  ;;  %v1697_v33 = vpack.c.bf16 %v1195_v32, %v1194_v31 }
  0xf3   : > { %v1693_v30 = vpack.c.bf16 %v1193_v29, %v1192_v28 }
 0x1c0   : > { %v1500_v22 = vpop.f32.mrb[0].mxu1 }
 0x1c1   : > { %v755_v23 = vpop.f32.mrb[1].mxu1  ;;  %v761_v25 = vadd.f32 %v1500_v22, %v1384_v21 }
 0x1c2   : > { %v756_v24 = vadd.f32 %v1384_v21, %v755_v23  ;;  %v1188_v21 = vld [vmem:[%s2147_s14 + $0x10] sm:$0xff]  ;;  %v1189_v23 = vld [vmem:[%s2147_s14 + $0x18] sm:$0xff] }
 0x1c3   : > { %v765_v27 = vmax.f32 %v761_v25, 0.0  ;;  %v1190_v25 = vld [vmem:[%s2147_s14 + $0x20] sm:$0xff] }
 0x1c4   : > { %v764_v26 = vmax.f32 %v756_v24, 0.0  ;;  %v1685_v24 = vpack.c.bf16 %v1189_v23, %v1188_v21 }
 0x1c6   : > { %875 = vmatmul.mubr.f32.vlgmr.msra.gmra.mrb[2].mxu0 %v764_v26  ;;  %v1191_v26 = vld [vmem:[%s2147_s14 + $0x28] sm:$0xff] }
 0x1c7   : > { %880 = vmatprep.mubr.f32.mxu0 %v1737_v20  ;;  %1652 = vmatpush3.bf16.msra.mxu0 %v1649_v35  ;;  %v1187_v20 = vld [vmem:[%s2147_s14 + $0x8] sm:$0xff]  ;;  %v1197_v35 = vld [vmem:[%s2147_s14 + $0x58] sm:$0xff] }
 0x1c8   : > { %1654 = vmatprep.subr.bf16.mxu0 %v1653_v37  ;;  %v1681_v22 = vpack.c.bf16 %v1187_v20, %v1186_v19  ;;  %v1701_v36 = vpack.c.bf16 %v1197_v35, %v1196_v34 }
 0x1ca   : > { %881 = vmatmul.mubr.f32.gmra.mrb[4].mxu0 %v765_v27  ;;  %1682 = vmatprep.subr.bf16.mxu1 %v1681_v22  ;;  %v1689_v27 = vpack.c.bf16 %v1191_v26, %v1190_v25 }
 0x1cb   : > { %1656 = vmatpush3.bf16.msra.mxu0 %v1653_v37  ;;  %v1198_v37 = vld [vmem:[%s2147_s14 + $0x60] sm:$0xff] }
 0x1cc   : > { %1658 = vmatprep.subr.bf16.mxu0 %v1657_v40  ;;  %v1705_v39 = vpack.c.bf16 %v1199_v38, %v1198_v37 }
 0x1cf   : > { %1660 = vmatpush3.bf16.msra.mxu0 %v1657_v40  ;;  %v1390_v40 = vld [vmem:[%s2144_s11] ss:$0 sm:$0xff] }
 0x1d0   : > { %1662 = vmatprep.subr.bf16.mxu0 %v1661_v43 }
 0x1d3   : > { %1664 = vmatpush3.bf16.msra.mxu0 %v1661_v43 }
 0x1d4   : > { %1666 = vmatprep.subr.bf16.mxu0 %v1665_v46 }
 0x1d7   : > { %1668 = vmatpush3.bf16.msra.mxu0 %v1665_v46 }
 0x1d8   : > { %1670 = vmatprep.subr.bf16.mxu0 %v1669_v49 }
 0x1db   : > { %1672 = vmatpush3.bf16.msra.mxu0 %v1669_v49  ;;  %v1709_v49 = vpack.c.bf16 %v1201_v48, %v1200_v47 }
 0x1dc   : > { %1674 = vmatprep.subr.bf16.mxu0 %v1673_v52 }
 0x1df   : > { %1676 = vmatpush3.bf16.msra.mxu0 %v1673_v52 }
 0x1e0   : > { %1678 = vmatprep.subr.bf16.mxu0 %v1677_v18 }
 0x1e3   : > { %1680 = vmatpush3.bf16.msra.mxu0 %v1677_v18 }
 0x299   : > { %v876_v60 = vpop.f32.mrb[2].mxu0 }
 0x29a   : > { %v877_v61 = vadd.f32 %v876_v60, %v803_v58  ;;  %v878_v62 = vpop.f32.mrb[3].mxu0 }
 0x29b   : > { %v879_v63 = vadd.f32 %v878_v62, %v807_v59 }
 0x29c   : > { %887 = vst [vmem:[%s2055_s28 + $0x8] sm:$0xff] %v877_v61 }
 0x29d   : > { %888 = vst [vmem:[%s2055_s28 + $0x10] sm:$0xff] %v879_v63  ;;  %v893_v0 = vmul.f32 0.5, %v879_v63  ;;  %v882_v1 = vpop.f32.mrb[4].mxu0 }
 0x29e   : > { %v883_v2 = vadd.f32 %v882_v1, %v803_v58  ;;  %v884_v3 = vpop.f32.mrb[5].mxu0 }
 0x29f   : > { %v895_v4 = vmul.f32 1.442695, %v893_v0  ;;  %v885_v5 = vadd.f32 %v884_v3, %v807_v59 }
 0x2a0   : > { %889 = vst [vmem:[%s2055_s28 + $0x20] sm:$0xff] %v883_v2 }
 0x2a1   : > { %1725 = vpow2.f32 %v895_v4  ;;  %890 = vst [vmem:[%s2055_s28 + $0x28] sm:$0xff] %v885_v5  ;;  %v894_v6 = vmul.f32 0.5, %v885_v5 }
 0x2a3   : > { %v897_v7 = vmul.f32 1.442695, %v894_v6 }
 0x2a5   : > { %1727 = vpow2.f32 %v897_v7 }
 0x2ab   : > { %v1726_v9 = vpop.eup %1725 }
 0x2ac   : > { %v899_v10 = vmul.f32 %v1726_v9, %v891_v8 }
 0x2ae   : > { %v901_v12 = vadd.f32 %v899_v10, %v877_v61 }
 0x2af   : > { %v1728_v13 = vpop.eup %1727 }
 0x2b0   : > { %1508 = vmatprep.mubr.msk.f32.mxu1 %vm993_vm3, %v901_v12  ;;  %v900_v14 = vmul.f32 %v1728_v13, %v892_v11 }
 0x2b2   : > { %v902_v15 = vadd.f32 %v900_v14, %v883_v2 }
 0x2b4   : > { %1509 = vmatmul.mubr.msk.f32.vlgmr.msra.gmra.mrb[2].mxu1 %vm993_vm3, %v902_v15 }
 0x2b5   : > { %1684 = vmatpush3.bf16.msra.mxu1 %v1681_v22 }
 0x2b6   : > { %1686 = vmatprep.subr.bf16.mxu1 %v1685_v24 }
 0x2b9   : > { %1688 = vmatpush3.bf16.msra.mxu1 %v1685_v24 }
 0x2ba   : > { %1690 = vmatprep.subr.bf16.mxu1 %v1689_v27 }
 0x2bd   : > { %1692 = vmatpush3.bf16.msra.mxu1 %v1689_v27 }
 0x2be   : > { %1694 = vmatprep.subr.bf16.mxu1 %v1693_v30 }
 0x2c1   : > { %1696 = vmatpush3.bf16.msra.mxu1 %v1693_v30 }
 0x2c2   : > { %1698 = vmatprep.subr.bf16.mxu1 %v1697_v33 }
 0x2c5   : > { %1700 = vmatpush3.bf16.msra.mxu1 %v1697_v33 }
 0x2c6   : > { %1702 = vmatprep.subr.bf16.mxu1 %v1701_v36 }
 0x2c9   : > { %1704 = vmatpush3.bf16.msra.mxu1 %v1701_v36 }
 0x2ca   : > { %1706 = vmatprep.subr.bf16.mxu1 %v1705_v39 }
 0x2cd   : > { %1708 = vmatpush3.bf16.msra.mxu1 %v1705_v39 }
 0x2ce   : > { %1710 = vmatprep.subr.bf16.mxu1 %v1709_v49 }
 0x2d1   : > { %1712 = vmatpush3.bf16.msra.mxu1 %v1709_v49 }
 0x387   : > { %v1510_v41 = vpop.f32.mrb[2].mxu1 }
 0x388   : > { %v1083_v42 = vadd.f32 %v1510_v41, %v1390_v40  ;;  %v1066_v43 = vpop.f32.mrb[3].mxu1 }
 0x389   : > { %v1082_v44 = vadd.f32 %v1390_v40, %v1066_v43 }
 0x38a   : > { %v1085_v46 = vmax.f32 %v1083_v42, 0.0 }
 0x38b   : > { %v1084_v45 = vmax.f32 %v1082_v44, 0.0 }
 0x38d   : > { %1543 = vmatprep.mubr.f32.mxu0 %v1084_v45 }
 0x38e   : > { %1544 = vmatmul.mubr.f32.vlgmr.msra.gmra.mrb[6].mxu0 %v1085_v46 }
 0x461   : > { %v1545_v51 = vpop.f32.mrb[6].mxu0 }
 0x462   : > { %v1181_v52 = vadd.f32 %v1545_v51, %v1391_v50  ;;  %v1175_v53 = vpop.f32.mrb[7].mxu0 }
 0x463   : > { %v1176_v54 = vadd.f32 %v1391_v50, %v1175_v53 }
 0x464   : > { %v1185_v56 = vmax.f32 %v1181_v52, 0.0 }
 0x465   : > { %v1184_v55 = vmax.f32 %v1176_v54, 0.0 }
 0x467   : > { %1578 = vmatprep.mubr.f32.mxu1 %v1184_v55 }
 0x468   : > { %1579 = vmatmul.mubr.f32.vlgmr.msra.gmra.mrb[4].mxu1 %v1185_v56 }
 0x53b   : > { %v1580_v58 = vpop.f32.mrb[4].mxu1 }
 0x53c   : > { %v1275_v59 = vpop.f32.mrb[5].mxu1  ;;  %v1281_v61 = vadd.f32 %v1580_v58, %v1392_v57 }
 0x53d   : > { %v1276_v60 = vadd.f32 %v1392_v57, %v1275_v59 }
 0x53e   : > { %1285 = vst [vmem:[%s2055_s28 + $0x18] sm:$0xff] %v1281_v61 }
 0x53f   : > { %1284 = vst [vmem:[%s2055_s28] sm:$0xff] %v1276_v60 }
 0x540 PF: > { %s26_s21 = sadd.s32 1, %s1735_s21  }
 0x541   : > { %p23_p4 = scmp.ge.s32.totalorder %s26_s21, 4  }
 0x543   :  { %25 = sbr.rel (!%p23_p4) target bundleno = 2 (0x2), region = 120 }

</bundles_post_ra>
